<compile_context>
chip_gen: v6e
topology: v6e:2x2x1
jax: 0.10.0
libtpu: 0.0.40
codegen_flags: <defaults>
</compile_context>

<pallas_src>
import functools

import jax
import jax.numpy as jnp
from jax.experimental import pallas as pl
from jax.experimental.pallas import tpu as pltpu

LANE = 128


def _round_up(x, m):
    return ((x + m - 1) // m) * m


def _nbytes(a):
    return a.size * a.dtype.itemsize


# ----------------------------------------------------------------------------
# Per-generation configuration (v7x: 64 MiB VMEM / 2 TCs; v5e/v6e: 128 MiB / 1 TC)
# ----------------------------------------------------------------------------
def _tpu_defaults():
    kind = ""
    try:
        kind = jax.devices()[0].device_kind.lower()
    except Exception:
        pass
    num_tc = 2 if "v7" in kind else 1
    phys_vmem = None
    try:
        phys_vmem = int(pltpu.get_tpu_info().vmem_capacity_bytes)
    except Exception:
        pass
    if phys_vmem is None:
        phys_vmem = (64 if "v7" in kind else 128) * 1024 * 1024
    # explicit scoped-VMEM limit (v5e default is only 16 MiB); leave headroom
    vmem_limit = max(32 * 1024 * 1024, min(phys_vmem * 3 // 4, 96 * 1024 * 1024))
    max_tile_b = 512 if phys_vmem <= 64 * 1024 * 1024 else 1024
    return vmem_limit, max_tile_b, num_tc


_VMEM_LIMIT, _MAX_TILE_B, _NUM_TC = _tpu_defaults()
_VMEM_BUDGET = int(_VMEM_LIMIT * 0.85)

_BUFFERED_ONE_OK = None


def _buffered_one_supported():
    """Probe once whether pipeline_mode=pl.Buffered(1) (single-buffered grid-invariant
    operands) is supported and correct; otherwise fall back to default buffering."""
    global _BUFFERED_ONE_OK
    if _BUFFERED_ONE_OK is None:
        try:
            def _probe(x_ref, o_ref):
                o_ref[...] = x_ref[...] * 2.0

            x = jnp.ones((8, LANE), jnp.float32)
            out = pl.pallas_call(
                _probe,
                grid=(2,),
                in_specs=[pl.BlockSpec((8, LANE), lambda i: (0, 0),
                                       pipeline_mode=pl.Buffered(1))],
                out_specs=pl.BlockSpec((8, LANE), lambda i: (i, 0)),
                out_shape=jax.ShapeDtypeStruct((16, LANE), jnp.float32),
            )(x)
            _BUFFERED_ONE_OK = bool(jnp.all(jax.block_until_ready(out) == 2.0))
        except Exception:
            _BUFFERED_ONE_OK = False
    return _BUFFERED_ONE_OK


def _const_spec(shape):
    """BlockSpec for a grid-invariant operand (whole array, constant block index)."""
    n = len(shape)

    def index_map(i):
        return (0,) * n

    if _buffered_one_supported():
        return pl.BlockSpec(shape, index_map, pipeline_mode=pl.Buffered(1))
    return pl.BlockSpec(shape, index_map)


def _agg_tile_rows(n_rows, n_samples, d_in, in_itemsize, out_cols, out_itemsize,
                   weight_bytes, s_major):
    """Pick the batch-tile row count from the per-generation VMEM budget."""
    s_eff = n_samples if s_major else _round_up(n_samples, 8)  # sublane padding
    per_row = (2 * s_eff * d_in * in_itemsize      # neighbor tile (double-buffered)
               + 2 * d_in * in_itemsize            # x tile
               + 2 * out_cols * out_itemsize)      # output tile
    w_mult = 1 if _buffered_one_supported() else 2
    budget = max(_VMEM_BUDGET - w_mult * weight_bytes, 2 * 1024 * 1024)
    tb = (budget // per_row) // 8 * 8
    tb = max(8, min(tb, _MAX_TILE_B))
    if _NUM_TC > 1 and n_rows > 8:
        # keep >= 2 grid steps per TensorCore so ("parallel",) spans both v7x cores
        tb = min(tb, max(8, _round_up(-(-n_rows // (2 * _NUM_TC)), 8)))
    return min(tb, _round_up(n_rows, 8))


# ----------------------------------------------------------------------------
# Fused MeanAggregator kernel (batch-tiled, lane-padded outputs), with optional
# fused F.normalize / F.normalize + fc epilogue for the final layer.
#   x      : (TB, Din)                      bf16/f32
#   neibs  : (S, TB, Din) or (TB, S, Din)   bf16/f32   (1/S folded into wn)
#   w_x    : (Din, O_pad)  bf16     w_n : (Din, O_pad) bf16 (pre-scaled by 1/S)
#   out    : (TB, 2*O_pad) or (TB, C_pad)
# ----------------------------------------------------------------------------
def _agg_kernel(x_ref, neib_ref, wx_ref, wn_ref, *rest, n_samples, o_pad,
                apply_relu, s_major, epilogue):
    if epilogue == "norm_fc":
        fcwx_ref, fcwn_ref, fcb_ref, out_ref = rest
    else:
        (out_ref,) = rest

    # neighbor mean: the 1/S is folded into wn; accumulate in f32 on the VPU
    if s_major:                                  # (S, TB, D): full-tile slices
        acc = neib_ref[0].astype(jnp.float32)
        for s in range(1, n_samples):
            acc = acc + neib_ref[s].astype(jnp.float32)
    else:                                        # (TB, S, D): small later layers
        acc = neib_ref[:, 0, :].astype(jnp.float32)
        for s in range(1, n_samples):
            acc = acc + neib_ref[:, s, :].astype(jnp.float32)

    hx = jnp.dot(x_ref[...].astype(jnp.bfloat16), wx_ref[...],
                 preferred_element_type=jnp.float32)
    hn = jnp.dot(acc.astype(jnp.bfloat16), wn_ref[...],
                 preferred_element_type=jnp.float32)
    if apply_relu:
        hx = jnp.maximum(hx, 0.0)
        hn = jnp.maximum(hn, 0.0)

    if epilogue is None:
        # lane-dense, 128-aligned halves: no concatenate, unmasked stores
        out_ref[:, :o_pad] = hx.astype(out_ref.dtype)
        out_ref[:, o_pad:] = hn.astype(out_ref.dtype)
        return

    # fused F.normalize(dim=1); padded columns are exactly zero so they do not
    # contribute to the squared norm
    ss = (jnp.sum(hx * hx, axis=1, keepdims=True)
          + jnp.sum(hn * hn, axis=1, keepdims=True))
    inv = jax.lax.rsqrt(jnp.maximum(ss, 1e-24))  # == 1 / max(||x||, 1e-12), torch eps
    hx = hx * inv
    hn = hn * inv
    if epilogue == "norm":
        out_ref[:, :o_pad] = hx.astype(out_ref.dtype)
        out_ref[:, o_pad:] = hn.astype(out_ref.dtype)
    else:  # "norm_fc": fused final Linear over the split [hx | hn] layout
        out_ref[...] = (
            jnp.dot(hx.astype(jnp.bfloat16), fcwx_ref[...],
                    preferred_element_type=jnp.float32)
            + jnp.dot(hn.astype(jnp.bfloat16), fcwn_ref[...],
                      preferred_element_type=jnp.float32)
            + fcb_ref[...]
        ).astype(out_ref.dtype)


def mean_aggregator(x, neibs, w_x, w_n, *, apply_relu, s_major, epilogue=None,
                    fc_wx=None, fc_wn=None, fc_b=None, out_dtype=jnp.float32,
                    tb=None):
    if s_major:
        S, B, d_in = neibs.shape
    else:
        B, S, d_in = neibs.shape
    o_pad = w_x.shape[1]
    out_cols = fc_b.shape[1] if epilogue == "norm_fc" else 2 * o_pad

    if tb is None:
        wbytes = _nbytes(w_x) + _nbytes(w_n)
        if epilogue == "norm_fc":
            wbytes += _nbytes(fc_wx) + _nbytes(fc_wn) + _nbytes(fc_b)
        tb = _agg_tile_rows(B, S, d_in, x.dtype.itemsize, out_cols,
                            jnp.dtype(out_dtype).itemsize, wbytes, s_major)
    b_pad = _round_up(B, tb)
    if b_pad != B:
        x = jnp.pad(x, ((0, b_pad - B), (0, 0)))
        if s_major:
            neibs = jnp.pad(neibs, ((0, 0), (0, b_pad - B), (0, 0)))
        else:
            neibs = jnp.pad(neibs, ((0, b_pad - B), (0, 0), (0, 0)))

    if s_major:
        neib_spec = pl.BlockSpec((S, tb, d_in), lambda i: (0, i, 0))
    else:
        neib_spec = pl.BlockSpec((tb, S, d_in), lambda i: (i, 0, 0))

    in_specs = [
        pl.BlockSpec((tb, d_in), lambda i: (i, 0)),
        neib_spec,
        _const_spec((d_in, o_pad)),
        _const_spec((d_in, o_pad)),
    ]
    args = [x, neibs, w_x, w_n]
    if epilogue == "norm_fc":
        c_pad = fc_b.shape[1]
        in_specs += [_const_spec((o_pad, c_pad)),
                     _const_spec((o_pad, c_pad)),
                     _const_spec((1, c_pad))]
        args += [fc_wx, fc_wn, fc_b]

    kernel = functools.partial(_agg_kernel, n_samples=S, o_pad=o_pad,
                               apply_relu=apply_relu, s_major=s_major,
                               epilogue=epilogue)
    out = pl.pallas_call(
        kernel,
        grid=(b_pad // tb,),
        out_shape=jax.ShapeDtypeStruct((b_pad, out_cols), out_dtype),
        in_specs=in_specs,
        out_specs=pl.BlockSpec((tb, out_cols), lambda i: (i, 0)),
        compiler_params=pltpu.CompilerParams(
            dimension_semantics=("parallel",),
            vmem_limit_bytes=_VMEM_LIMIT,
        ),
    )(*args)
    return out if b_pad == B else out[:B]


# ----------------------------------------------------------------------------
# Weight padding: map real (rows, cols) Linear weights into the lane-padded,
# split-concat [hx | pad | hn | pad] layout produced by the aggregator kernel.
# ----------------------------------------------------------------------------
def _pad_weight(w, rows_pad, cols_pad, prev_o=None, prev_o_pad=None):
    rows, cols = w.shape
    out = jnp.zeros((rows_pad, cols_pad), jnp.float32)
    if prev_o is None:
        out = out.at[:rows, :cols].set(w)
    else:
        out = out.at[:prev_o, :cols].set(w[:prev_o])
        out = out.at[prev_o_pad:prev_o_pad + prev_o, :cols].set(w[prev_o:])
    return out


def _fan_groups(fans):
    """Group consecutive pyramid levels that share the same fan-out."""
    groups = []
    k = 0
    while k < len(fans):
        e = k + 1
        while e < len(fans) and fans[e] == fans[k]:
            e += 1
        groups.append((k, e, fans[k]))
        k = e
    return groups


# ----------------------------------------------------------------------------
# Glue: deterministic parameter init + forward pass mirroring att_net.forward
# ----------------------------------------------------------------------------
class AttNetPallas:
    def __init__(self, key, input_dim, n_nodes, n_classes, layer_specs,
                 max_degree=8):
        assert len(layer_specs) >= 1
        self.layer_specs = layer_specs
        self.n_nodes = n_nodes
        self.n_classes = n_classes
        self.input_dim = input_dim

        all_fans = sorted({s[k] for s in layer_specs
                           for k in ("n_train_samples", "n_val_samples")})
        assert max(all_fans) <= max_degree

        k_adj, k_fc_w, k_fc_b, *k_layers = jax.random.split(
            key, 3 + 2 * len(layer_specs))

        # Deterministic adjacency (neighbor table) used by the sampler.
        # TODO(synk): the reference sampler_class draws uniform random neighbors
        # per call; here sampling takes the first n_samples columns.
        self.adj = jax.random.randint(k_adj, (n_nodes, max_degree), 0, n_nodes,
                                      dtype=jnp.int32)

        dim = input_dim          # real input width of the current layer
        prev_o = None            # real / padded half-width of the previous output
        prev_o_pad = None
        self.agg_params = []     # (wx_bf16, {S: wn_bf16 / S}, activation, O, O_pad)
        self.ref_params = []     # unpadded f32 weights for the pure-JAX reference
        for spec, kx, kn in zip(layer_specs, k_layers[0::2], k_layers[1::2]):
            O = spec["output_dim"]
            O_pad = _round_up(O, LANE)
            bound = 1.0 / (dim ** 0.5)                # torch.nn.Linear default init
            w_x = jax.random.uniform(kx, (dim, O), jnp.float32, -bound, bound)
            w_n = jax.random.uniform(kn, (dim, O), jnp.float32, -bound, bound)
            rows_pad = dim if prev_o is None else 2 * prev_o_pad
            wx_p = _pad_weight(w_x, rows_pad, O_pad, prev_o, prev_o_pad)
            wn_p = _pad_weight(w_n, rows_pad, O_pad, prev_o, prev_o_pad)
            # fold the 1/S of the neighbor mean into the weight once per fan-out
            wn_by_s = {S: (wn_p * (1.0 / S)).astype(jnp.bfloat16) for S in all_fans}
            self.agg_params.append((wx_p.astype(jnp.bfloat16), wn_by_s,
                                    spec["activation"], O, O_pad))
            self.ref_params.append((w_x, w_n, spec["activation"]))
            dim = 2 * O            # concat combine_fn doubles the width
            prev_o, prev_o_pad = O, O_pad

        bound = 1.0 / (dim ** 0.5)
        fc_w = jax.random.uniform(k_fc_w, (dim, n_classes), jnp.float32,
                                  -bound, bound)
        fc_b = jax.random.uniform(k_fc_b, (n_classes,), jnp.float32,
                                  -bound, bound)
        self.c_pad = _round_up(n_classes, LANE)
        fcw_p = _pad_weight(fc_w, 2 * prev_o_pad, self.c_pad, prev_o, prev_o_pad)
        # split the fc weight to match the kernel's [hx | hn] padded layout
        self.fc_wx = fcw_p[:prev_o_pad].astype(jnp.bfloat16)
        self.fc_wn = fcw_p[prev_o_pad:].astype(jnp.bfloat16)
        self.fc_b = jnp.pad(fc_b, (0, self.c_pad - n_classes)).reshape(1, self.c_pad)
        self.ref_fc_w, self.ref_fc_b = fc_w, fc_b
        self.out_o_real, self.out_o_pad = prev_o, prev_o_pad

    def forward(self, ids, feats, train=True, encode_only=False):
        key = "n_train_samples" if train else "n_val_samples"
        fans = [spec[key] for spec in self.layer_specs]
        L = len(self.layer_specs)

        # Stage features in bf16 (halves the gather + kernel-read HBM traffic).
        # Callers can pass bf16 feats to skip this conversion pass entirely.
        feats_b = feats if feats.dtype == jnp.bfloat16 else feats.astype(jnp.bfloat16)

        # --- sample the id pyramid (deterministic sampler, see __init__ TODO) ---
        level_ids = [jnp.asarray(ids, jnp.int32)]
        for k in range(L):
            level_ids.append(self.adj[level_ids[-1], :fans[k]].reshape(-1))
        sizes = [int(a.shape[0]) for a in level_ids]

        stack = None
        for j, (wx, wn_by_s, act, O, O_pad) in enumerate(self.agg_params):
            n_lvls = len(sizes) - 1
            is_last = (j == L - 1)
            if is_last:
                epilogue = "norm" if encode_only else "norm_fc"
                out_dtype = jnp.float32
            else:
                epilogue = None
                out_dtype = jnp.bfloat16       # intermediate activations stay bf16
            if epilogue == "norm_fc":
                fc_kwargs = dict(fc_wx=self.fc_wx, fc_wn=self.fc_wn, fc_b=self.fc_b)
            else:
                fc_kwargs = dict(fc_wx=None, fc_wn=None, fc_b=None)
            relu = (act == "relu")

            roff = [0]
            for s_ in sizes:
                roff.append(roff[-1] + s_)

            outs = []
            for k0, k1, S in _fan_groups(fans[:n_lvls]):
                nx = sum(sizes[k0:k1])
                wn = wn_by_s[S]
                if j == 0:
                    # First layer reads straight from the bf16 feature table: ids
                    # are stacked / padded / transposed so a single XLA gather lands
                    # the neighbors in the kernel's s-major (S, rows, D) layout.
                    out_cols = self.c_pad if epilogue == "norm_fc" else 2 * O_pad
                    wbytes = _nbytes(wx) + _nbytes(wn)
                    if epilogue == "norm_fc":
                        wbytes += (_nbytes(self.fc_wx) + _nbytes(self.fc_wn)
                                   + _nbytes(self.fc_b))
                    tb = _agg_tile_rows(nx, S, wx.shape[0], 2, out_cols,
                                        jnp.dtype(out_dtype).itemsize, wbytes,
                                        s_major=True)
                    nx_pad = _round_up(nx, tb)
                    x_ids = jnp.concatenate([level_ids[m] for m in range(k0, k1)])
                    nb_ids = jnp.concatenate(
                        [level_ids[m] for m in range(k0 + 1, k1 + 1)])
                    if nx_pad != nx:   # pad the (tiny) id arrays, not the features
                        x_ids = jnp.pad(x_ids, (0, nx_pad - nx))
                        nb_ids = jnp.pad(nb_ids, (0, (nx_pad - nx) * S))
                    x_in = feats_b[x_ids]
                    nb_in = feats_b[nb_ids.reshape(nx_pad, S).T]
                    out_g = mean_aggregator(
                        x_in, nb_in, wx, wn, apply_relu=relu, s_major=True,
                        epilogue=epilogue, out_dtype=out_dtype, tb=tb,
                        **fc_kwargs)[:nx]
                else:
                    # Later (S x smaller) layers consume contiguous prefix/suffix
                    # views of the previous stacked output: no gather, no concat.
                    x_in = stack[roff[k0]:roff[k1]]
                    nb_in = stack[roff[k0 + 1]:roff[k1 + 1]].reshape(
                        nx, S, stack.shape[1])
                    out_g = mean_aggregator(
                        x_in, nb_in, wx, wn, apply_relu=relu, s_major=False,
                        epilogue=epilogue, out_dtype=out_dtype,
                        **fc_kwargs)[:nx]
                outs.append(out_g)
            stack = outs[0] if len(outs) == 1 else jnp.concatenate(outs, axis=0)
            sizes = sizes[:n_lvls]

        assert len(sizes) == 1, "len(all_feats) != 1"
        out = stack
        if encode_only:
            O, O_pad = self.out_o_real, self.out_o_pad
            # strip lane padding, restoring the torch concat column order
            return jnp.concatenate([out[:, :O], out[:, O_pad:O_pad + O]], axis=1)
        return out[:, :self.n_classes]


# ----------------------------------------------------------------------------
# Pure-JAX float32 reference matching the PyTorch forward (same deterministic
# sampler) for correctness checking.
# ----------------------------------------------------------------------------
def reference_forward(model, ids, feats, train=True, encode_only=False):
    key = "n_train_samples" if train else "n_val_samples"
    fans = [s[key] for s in model.layer_specs]
    cur = jnp.asarray(ids, jnp.int32)
    all_feats = [feats[cur]]
    for S in fans:
        cur = model.adj[cur, :S].reshape(-1)
        all_feats.append(feats[cur])
    for w_x, w_n, act in model.ref_params:
        new = []
        for k in range(len(all_feats) - 1):
            x = all_feats[k]
            nb = all_feats[k + 1].reshape(x.shape[0], -1, x.shape[1])
            h = jnp.concatenate([x @ w_x, nb.mean(axis=1) @ w_n], axis=1)
            if act == "relu":
                h = jnp.maximum(h, 0.0)
            new.append(h)
        all_feats = new
    out = all_feats[0]
    out = out / jnp.maximum(jnp.linalg.norm(out, axis=1, keepdims=True), 1e-12)
    if encode_only:
        return out
    return out @ model.ref_fc_w + model.ref_fc_b


if __name__ == "__main__":
    key = jax.random.PRNGKey(0)
    k_feat, k_ids, k_model = jax.random.split(key, 3)

    n_nodes, input_dim, n_classes = 64, 32, 8
    batch = 8
    layer_specs = [
        {"n_train_samples": 4, "n_val_samples": 4, "output_dim": 16,
         "activation": "relu"},
        {"n_train_samples": 4, "n_val_samples": 4, "output_dim": 16,
         "activation": None},
    ]

    feats = jax.random.normal(k_feat, (n_nodes, input_dim), jnp.float32)
    ids = jax.random.randint(k_ids, (batch,), 0, n_nodes, dtype=jnp.int32)

    model = AttNetPallas(k_model, input_dim, n_nodes, n_classes, layer_specs)

    logits = jax.block_until_ready(model.forward(ids, feats, train=True))
    assert logits.shape == (batch, n_classes), logits.shape
    assert logits.dtype == jnp.float32
    assert bool(jnp.all(jnp.isfinite(logits)))

    emb = jax.block_until_ready(
        model.forward(ids, feats, train=False, encode_only=True))
    assert emb.shape == (batch, 2 * layer_specs[-1]["output_dim"]), emb.shape
    assert bool(jnp.all(jnp.isfinite(emb)))

    # compare against the f32 reference; tolerance covers the bf16 staging / MXU
    ref_logits = reference_forward(model, ids, feats, train=True)
    ref_emb = reference_forward(model, ids, feats, train=False, encode_only=True)
    assert bool(jnp.allclose(logits, ref_logits, rtol=5e-2, atol=2e-2)), (
        float(jnp.max(jnp.abs(logits - ref_logits))))
    assert bool(jnp.allclose(emb, ref_emb, rtol=5e-2, atol=2e-2)), (
        float(jnp.max(jnp.abs(emb - ref_emb))))

    print("KERNEL_OK")
</pallas_src>

<mosaic_0001>
module attributes {stable_mosaic.version = 11 : i64} {
  func.func @_probe(%arg0: i32, %arg1: memref<8x128xf32, #tpu.memory_space<vmem>>, %arg2: memref<8x128xf32, #tpu.memory_space<vmem>>) attributes {dimension_semantics = [#tpu.dimension_semantics<arbitrary>], iteration_bounds = array<i64: 2>, scalar_prefetch = 0 : i64, scratch_operands = 0 : i64, tpu.core_type = #tpu.core_type<tc>, window_params = [{pipeline_mode = #tpu.pipeline_mode<synchronous>, transform_indices = @transform_0, window_bounds = array<i64: 8, 128>}, {transform_indices = @transform_1, window_bounds = array<i64: 8, 128>}]} {
    %c0 = arith.constant 0 : index
    %c0_0 = arith.constant 0 : index
    %0 = vector.load %arg1[%c0, %c0_0] : memref<8x128xf32, #tpu.memory_space<vmem>>, vector<8x128xf32>
    %cst = arith.constant 2.000000e+00 : f32
    %1 = vector.broadcast %cst : f32 to vector<8x128xf32>
    %2 = arith.mulf %0, %1 : vector<8x128xf32>
    %c0_1 = arith.constant 0 : index
    %c0_2 = arith.constant 0 : index
    %3 = vector.load %arg2[%c0_1, %c0_2] : memref<8x128xf32, #tpu.memory_space<vmem>>, vector<8x128xf32>
    tpu.vector_store %arg2[%c0_1, %c0_2], %2 {strides = array<i32>} : memref<8x128xf32, #tpu.memory_space<vmem>>, vector<8x128xf32>,
    return
  }
  func.func @transform_0(%arg0: i32) -> (i32, i32) {
    %c0_i32 = arith.constant 0 : i32
    %c0_i32_0 = arith.constant 0 : i32
    %c0_i32_1 = arith.constant 0 : i32
    return %c0_i32, %c0_i32_0 : i32, i32
  }
  func.func @transform_1(%arg0: i32) -> (i32, i32) {
    %c0_i32 = arith.constant 0 : i32
    %c0_i32_0 = arith.constant 0 : i32
    return %arg0, %c0_i32 : i32, i32
  }
}

module attributes {stable_mosaic.version = 11 : i64} {
  func.func @_agg_kernel(%arg0: i32, %arg1: memref<40x32xbf16, #tpu.memory_space<vmem>>, %arg2: memref<4x40x32xbf16, #tpu.memory_space<vmem>>, %arg3: memref<32x128xbf16, #tpu.memory_space<vmem>>, %arg4: memref<32x128xbf16, #tpu.memory_space<vmem>>, %arg5: memref<40x256xbf16, #tpu.memory_space<vmem>>) attributes {dimension_semantics = [#tpu.dimension_semantics<parallel>], iteration_bounds = array<i64: 1>, scalar_prefetch = 0 : i64, scratch_operands = 0 : i64, tpu.core_type = #tpu.core_type<tc>, window_params = [{transform_indices = @transform_0, window_bounds = array<i64: 40, 32>}, {transform_indices = @transform_1, window_bounds = array<i64: 4, 40, 32>}, {pipeline_mode = #tpu.pipeline_mode<synchronous>, transform_indices = @transform_2, window_bounds = array<i64: 32, 128>}, {pipeline_mode = #tpu.pipeline_mode<synchronous>, transform_indices = @transform_3, window_bounds = array<i64: 32, 128>}, {transform_indices = @transform_4, window_bounds = array<i64: 40, 256>}]} {
    %c0 = arith.constant 0 : index
    %c0_0 = arith.constant 0 : index
    %c0_1 = arith.constant 0 : index
    %0 = vector.load %arg2[%c0, %c0_0, %c0_1] : memref<4x40x32xbf16, #tpu.memory_space<vmem>>, vector<1x40x32xbf16>
    %1 = vector.shape_cast %0 : vector<1x40x32xbf16> to vector<40x32xbf16>
    %2 = arith.extf %1 : vector<40x32xbf16> to vector<40x32xf32>
    %c1 = arith.constant 1 : index
    %c0_2 = arith.constant 0 : index
    %c0_3 = arith.constant 0 : index
    %3 = vector.load %arg2[%c1, %c0_2, %c0_3] : memref<4x40x32xbf16, #tpu.memory_space<vmem>>, vector<1x40x32xbf16>
    %4 = vector.shape_cast %3 : vector<1x40x32xbf16> to vector<40x32xbf16>
    %5 = arith.extf %4 : vector<40x32xbf16> to vector<40x32xf32>
    %6 = arith.addf %2, %5 : vector<40x32xf32>
    %c2 = arith.constant 2 : index
    %c0_4 = arith.constant 0 : index
    %c0_5 = arith.constant 0 : index
    %7 = vector.load %arg2[%c2, %c0_4, %c0_5] : memref<4x40x32xbf16, #tpu.memory_space<vmem>>, vector<1x40x32xbf16>
    %8 = vector.shape_cast %7 : vector<1x40x32xbf16> to vector<40x32xbf16>
    %9 = arith.extf %8 : vector<40x32xbf16> to vector<40x32xf32>
    %10 = arith.addf %6, %9 : vector<40x32xf32>
    %c3 = arith.constant 3 : index
    %c0_6 = arith.constant 0 : index
    %c0_7 = arith.constant 0 : index
    %11 = vector.load %arg2[%c3, %c0_6, %c0_7] : memref<4x40x32xbf16, #tpu.memory_space<vmem>>, vector<1x40x32xbf16>
    %12 = vector.shape_cast %11 : vector<1x40x32xbf16> to vector<40x32xbf16>
    %13 = arith.extf %12 : vector<40x32xbf16> to vector<40x32xf32>
    %14 = arith.addf %10, %13 : vector<40x32xf32>
    %c0_8 = arith.constant 0 : index
    %c0_9 = arith.constant 0 : index
    %15 = vector.load %arg1[%c0_8, %c0_9] : memref<40x32xbf16, #tpu.memory_space<vmem>>, vector<40x32xbf16>
    %c0_10 = arith.constant 0 : index
    %c0_11 = arith.constant 0 : index
    %16 = vector.load %arg3[%c0_10, %c0_11] : memref<32x128xbf16, #tpu.memory_space<vmem>>, vector<32x128xbf16>
    %cst = arith.constant dense<0.000000e+00> : vector<40x128xf32>
    %17 = tpu.matmul %15, %16, %cst {dimension_numbers = #tpu.dot_dimension_numbers<[1], [0], [0], [1], [0, 0, 1, 1], [], []>} : vector<40x32xbf16>, vector<32x128xbf16>, vector<40x128xf32> -> vector<40x128xf32>
    %18 = arith.truncf %14 : vector<40x32xf32> to vector<40x32xbf16>
    %c0_12 = arith.constant 0 : index
    %c0_13 = arith.constant 0 : index
    %19 = vector.load %arg4[%c0_12, %c0_13] : memref<32x128xbf16, #tpu.memory_space<vmem>>, vector<32x128xbf16>
    %cst_14 = arith.constant dense<0.000000e+00> : vector<40x128xf32>
    %20 = tpu.matmul %18, %19, %cst_14 {dimension_numbers = #tpu.dot_dimension_numbers<[1], [0], [0], [1], [0, 0, 1, 1], [], []>} : vector<40x32xbf16>, vector<32x128xbf16>, vector<40x128xf32> -> vector<40x128xf32>
    %cst_15 = arith.constant 0.000000e+00 : f32
    %21 = vector.broadcast %cst_15 : f32 to vector<40x128xf32>
    %22 = arith.maximumf %17, %21 : vector<40x128xf32>
    %cst_16 = arith.constant 0.000000e+00 : f32
    %23 = vector.broadcast %cst_16 : f32 to vector<40x128xf32>
    %24 = arith.maximumf %20, %23 : vector<40x128xf32>
    %25 = arith.truncf %22 : vector<40x128xf32> to vector<40x128xbf16>
    %c0_17 = arith.constant 0 : index
    %c0_18 = arith.constant 0 : index
    %26 = vector.load %arg5[%c0_17, %c0_18] : memref<40x256xbf16, #tpu.memory_space<vmem>>, vector<40x128xbf16>
    tpu.vector_store %arg5[%c0_17, %c0_18], %25 {strides = array<i32>} : memref<40x256xbf16, #tpu.memory_space<vmem>>, vector<40x128xbf16>,
    %27 = arith.truncf %24 : vector<40x128xf32> to vector<40x128xbf16>
    %c0_19 = arith.constant 0 : index
    %c128 = arith.constant 128 : index
    %28 = vector.load %arg5[%c0_19, %c128] : memref<40x256xbf16, #tpu.memory_space<vmem>>, vector<40x128xbf16>
    tpu.vector_store %arg5[%c0_19, %c128], %27 {strides = array<i32>} : memref<40x256xbf16, #tpu.memory_space<vmem>>, vector<40x128xbf16>,
    return
  }
  func.func @transform_0(%arg0: i32) -> (i32, i32) {
    %c0_i32 = arith.constant 0 : i32
    %c0_i32_0 = arith.constant 0 : i32
    return %arg0, %c0_i32 : i32, i32
  }
  func.func @transform_1(%arg0: i32) -> (i32, i32, i32) {
    %c0_i32 = arith.constant 0 : i32
    %c0_i32_0 = arith.constant 0 : i32
    %c0_i32_1 = arith.constant 0 : i32
    return %c0_i32, %arg0, %c0_i32_0 : i32, i32, i32
  }
  func.func @transform_2(%arg0: i32) -> (i32, i32) {
    %c0_i32 = arith.constant 0 : i32
    %c0_i32_0 = arith.constant 0 : i32
    %c0_i32_1 = arith.constant 0 : i32
    return %c0_i32, %c0_i32_0 : i32, i32
  }
  func.func @transform_3(%arg0: i32) -> (i32, i32) {
    %c0_i32 = arith.constant 0 : i32
    %c0_i32_0 = arith.constant 0 : i32
    %c0_i32_1 = arith.constant 0 : i32
    return %c0_i32, %c0_i32_0 : i32, i32
  }
  func.func @transform_4(%arg0: i32) -> (i32, i32) {
    %c0_i32 = arith.constant 0 : i32
    %c0_i32_0 = arith.constant 0 : i32
    return %arg0, %c0_i32 : i32, i32
  }
}

</mosaic_0001>

<bundles_post_ra>
// kernel: tpu_custom_call.1
= control target key start
LH: loop header
LB: loop body
LE: loop exit
PB: predicated region body
PF: predicated region fallthrough
CT: control target
= control target key end

     0   :  { %6 = vsyncpa [#allocation3], 0  ;;  %s448_s0 = inlined_call_operand.hbm [shape: f32[8,128], index: 0, kind: input, shape index: {}]   ;;  %s449_s1 = inlined_call_operand.hbm [shape: f32[16,128], index: 1, kind: output, shape index: {}]  }
   0x1   :  { %7 = vsyncpa [#allocation4], 0 }
   0x2   :  { %9 = vsyncpa [#allocation4 + $0x1], 0  ;;  %s348_s6 = smov 0   ;;  %s350_s7 = smov 0  }
   0x3   :  { %s352_s8 = smov 0   ;;  %s354_s9 = smov 0  }
   0x4 LB: > { %s369_s10 = sadd.s32 4294967295, %s334_s9   ;;  %s184_s11 = sadd.s32 4294967294, %s334_s9   ;;  %s334_s9 = sphi %s354_s9, %s457_s9   ;;  %s330_s8 = sphi %s352_s8, %s456_s8   ;;  %s326_s7 = sphi %s350_s7, %s455_s7   ;;  %s322_s6 = sphi %s348_s6, %s454_s6  }
   0x5   : > { %s373_s12 = sadd.s32 1, %s334_s9   ;;  %s43_s13 = sadd.s32 1, %s330_s8 }
   0x6   : > { %s40_s14 = ssub.s32 %s334_s9, %s373_s12  ;;  %p53_p0 = scmp.ne.s32.totalorder %s330_s8, %s326_s7 }
   0x7   : > { %p41_p1 = scmp.eq.s32.totalorder %s40_s14, 0  ;;  %p54_p2 = scmp.eq.s32.totalorder %s369_s10, 1 }
   0x8   : > { %p59_p3 = scmp.ne.s32.totalorder %s326_s7, %s322_s6  ;;  %p60_p4 = scmp.eq.s32.totalorder %s184_s11, 1 }
   0x9   : > { %s384_s15 = scalar_select %p41_p1, %s330_s8, %s43_s13  }
   0xa   : > { %p386_p5 = por %p54_p2, %p53_p0  ;;  %p390_p6 = por %p60_p4, %p59_p3 }
   0xb   : > { %p185_p7 = scmp.ge.s32.totalorder %s334_s9, 1  ;;  %p67_p8 = scmp.lt.s32.totalorder %s334_s9, 3 }
   0xc   : > { %s451_s17 = scalar_select %p390_p6, 1, 0 }
   0xd   : > { %p208_p9 = scmp.eq.s32.totalorder %s369_s10, 0  ;;  %p397_p10 = pnand %p185_p7, %p67_p8 }
   0xe   : > { %s336_s19 = smov [#allocation2]  }
   0xf   : > { %s80_s20 = sshll.u32 %s336_s19, 4  ;;  %p200_p11 = pneg %p397_p10  ;;  %s81_s20 = int_to_ptr.vmem [resolvable:$true] %s80_s20 }
  0x10   : > { %s255_s21 = scalar_lea.vmem %s81_s20, 128  ;;  %p263_p3 = scmp.lt.s32.totalorder %s81_s20, %s81_s20 }
  0x11   : > { %p201_p12 = pnand %p208_p9, %p200_p11  ;;  %p256_p0 = scmp.ne.s32.totalorder %s81_s20, %s255_s21 }
  0x12   : > { %p264_p4 = scmp.lt.s32.totalorder %s255_s21, %s255_s21 }
  0x13   : > { %p246_p13 = pneg %p201_p12 }
  0x14   : > { %p265_p6 = por %p264_p4, %p263_p3 }
  0x15   : > { %p258_p1 = pnand %p256_p0, %p246_p13 }
  0x17   : > { %p259_p2 = pneg %p258_p1 }
  0x19   : > { %p266_p7 = pnand %p265_p6, %p259_p2 }
  0x1b   : > { %269 = shalt.err (!%p266_p7)
}
  0x1c   : > { %203 = dma.hbm_to_vmem [thread:$0]  (!%p201_p12), %s448_s0, 128, %s81_s20, [#allocation3]  }
  0x1d   : > { %93 = sbr.rel (%p397_p10) target bundleno = 60 (0x3c), region = 24 }
  0x22   : > { %313 = dma.done.wait (%p208_p9), [#allocation3], 128  }
  0x23   : > { %315 = vsyncadd (%p208_p9), [#allocation3], 4294967168  ;;  %s105_s24 = sand.u32 1, %s326_s7   ;;  %s191_s28 = sshll.u32 %s369_s10, 7  ;;  %v108_v0 = vld [vmem:[#allocation2] sm:$0xff] }
  0x24   : > { %s189_s25 = sshll.u32 %s105_s24, 3  ;;  %v109_v1 = vmul.f32 2.0, %v108_v0  ;;  %s123_s2 = scalar_lea.hbm %s449_s1, %s191_s28 }
  0x25   : > { %s107_s26 = scalar_lea.vmem [#allocation5], %s189_s25  ;;  %s112_s3 = scalar_lea.sflag [#allocation4], %s105_s24 }
  0x26   : > { %s125_s27 = sshll.u32 %s107_s26, 4  ;;  %110 = vst [vmem:[%s107_s26] sm:$0xff] %v109_v1  ;;  %s337_s5 = smov [#allocation5]   ;;  %s126_s27 = int_to_ptr.vmem [resolvable:$true] %s125_s27 }
  0x27   : > { %s270_s4 = scalar_lea.vmem %s126_s27, 128  ;;  %s274_s11 = sshll.u32 %s337_s5, 4  ;;  %s275_s11 = int_to_ptr.vmem [resolvable:$false] %s274_s11 }
  0x28   : > { %p271_p6 = scmp.ne.s32.totalorder %s126_s27, %s270_s4  ;;  %s276_s13 = scalar_lea.vmem %s275_s11, 256 }
  0x29   : > { %p277_p10 = scmp.lt.s32.totalorder %s126_s27, %s275_s11  ;;  %p278_p11 = scmp.lt.s32.totalorder %s276_s13, %s270_s4 }
  0x2a   : > { %p272_p8 = pnand %p271_p6, %p386_p5 }
  0x2b   : > { %p279_p12 = por %p278_p11, %p277_p10 }
  0x2c   : > { %p273_p9 = pneg %p272_p8 }
  0x2e   : > { %p280_p13 = pnand %p279_p12, %p273_p9 }
  0x30   : > { %283 = shalt.err (!%p280_p13)
}
  0x31   : > { %s284_s10 = scalar_lea.hbm %s123_s2, 128  ;;  %s288_s19 = scalar_lea.hbm %s449_s1, 256 }
  0x32   : > { %p285_p0 = scmp.ne.s32.totalorder %s123_s2, %s284_s10  ;;  %p289_p3 = scmp.lt.s32.totalorder %s123_s2, %s449_s1 }
  0x33   : > { %p290_p4 = scmp.lt.s32.totalorder %s288_s19, %s284_s10 }
  0x34   : > { %p286_p1 = pnand %p285_p0, %p386_p5 }
  0x35   : > { %p291_p7 = por %p290_p4, %p289_p3 }
  0x36   : > { %p287_p2 = pneg %p286_p1 }
  0x38   : > { %p292_p6 = pnand %p291_p7, %p287_p2 }
  0x3a   : > { %295 = shalt.err (!%p292_p6)
}
  0x3b   : > { %198 = dma.vmem_to_hbm [thread:$0]  (%p386_p5), %s126_s27, 128, %s123_s2, %s112_s3  }
  0x3c PF: > { %p210_p8 = scmp.ge.s32.totalorder %s334_s9, 2  ;;  %s137_s22 = sand.u32 1, %s322_s6  }
  0x3d   : > { %p453_p9 = scmp.ne.s32.totalorder %s451_s17, 0  ;;  %s138_s23 = scalar_lea.sflag [#allocation4], %s137_s22 }
  0x3f   : > { %p205_p10 = pnand %p210_p8, %p453_p9 }
  0x41   : > { %p206_p11 = pneg %p205_p10 }
  0x43   : > { %317 = dma.done.wait (%p206_p11), %s138_s23, 128  }
  0x44   : > { %319 = vsyncadd (%p206_p11), %s138_s23, 4294967168  ;;  %p12_p12 = scmp.ge.s32.totalorder %s373_s12, 4   ;;  %s454_s6 = smov %s326_s7 }
  0x45   : > { %s455_s7 = smov %s330_s8  ;;  %s456_s8 = smov %s384_s15 }
  0x46   : > { %s457_s9 = smov %s373_s12  ;;  %14 = sbr.rel (!%p12_p12) target bundleno = 4 (0x4), region = 61 }
  0x4b   :  { %143 = vsyncpa [#allocation3], 1 }
  0x4c   :  { %145 = vsyncpa [#allocation3 + $0x1], 1 }
  0x4d   :  { %146 = vsyncpa [#allocation4], 1 }
  0x4e   :  { %148 = vsyncpa [#allocation4 + $0x1], 1 }

// kernel: tpu_custom_call.1
= control target key start
LH: loop header
LB: loop body
LE: loop exit
PB: predicated region body
PF: predicated region fallthrough
CT: control target
= control target key end

     0   :  { %v502_v1 = vmov 0.0   ;;  %vm503_vm0 = vmmov 0   ;;  %vm111_vm1 = vcmask 261120   ;;  %s608_s0 = inlined_call_operand.vmem [shape: bf16[40,32], index: 0, kind: input, shape index: {}]   ;;  %s609_s1 = inlined_call_operand.vmem [shape: bf16[4,40,32], index: 1, kind: input, shape index: {}]   ;;  %s610_s2 = inlined_call_operand.vmem [shape: bf16[32,128], index: 2, kind: input, shape index: {}]   ;;  %s611_s3 = inlined_call_operand.vmem [shape: bf16[32,128], index: 3, kind: input, shape index: {}]   ;;  %s612_s4 = inlined_call_operand.hbm [shape: bf16[40,256], index: 4, kind: output, shape index: {}]  }
   0x1   :  { %v473_v0 = vld [vmem:[%s610_s2 + $0x8] sm:$0xff]   ;;  %436 = vmatprep.subr.bf16.mxu0 %v502_v1  ;;  %452 = vmatprep.subr.bf16.mxu1 %v502_v1  ;;  %v475_v3 = vld [vmem:[%s610_s2] sm:$0xff]   ;;  %v339_v7 = vld [vmem:[%s609_s1 + $0x10] sm:$0xff]  }
   0x2   :  { %v474_v2 = vld [vmem:[%s611_s3 + $0x8] sm:$0xff]   ;;  %437 = vmatpush3.bf16.msra.mxu0 %v473_v0  ;;  %440 = vmatprep.mubr.msk.bf16.mxu0 %vm503_vm0, %v502_v1  ;;  %v476_v4 = vld [vmem:[%s611_s3] sm:$0xff]   ;;  %v420_v8 = vld [vmem:[%s609_s1 + $0x18] sm:$0xff]   ;;  %v35_v12 = vunpack.c.h.bf16 %v339_v7 }
   0x3   :  { %453 = vmatpush3.bf16.msra.mxu1 %v474_v2  ;;  %438 = vmatprep.subr.bf16.mxu0 %v502_v1  ;;  %v477_v5 = vld [vmem:[%s608_s0] sm:$0xff]   ;;  %v397_v11 = vunpack.c.l.bf16 %v420_v8  ;;  %v422_v13 = vld [vmem:[%s609_s1 + $0x28] sm:$0xff]   ;;  %v349_v14 = vld [vmem:[%s609_s1 + $0x38] sm:$0xff]   ;;  %v398_v23 = vunpack.c.h.bf16 %v420_v8 }
   0x4   :  { %454 = vmatprep.subr.bf16.mxu1 %v502_v1  ;;  %456 = vmatprep.mubr.msk.bf16.mxu1 %vm503_vm0, %v502_v1  ;;  %v388_v6 = vld [vmem:[%s609_s1] sm:$0xff]   ;;  %v405_v16 = vunpack.c.l.bf16 %v422_v13  ;;  %v406_v17 = vunpack.c.h.bf16 %v422_v13  ;;  %v67_v21 = vunpack.c.h.bf16 %v349_v14  ;;  %v419_v22 = vld [vmem:[%s609_s1 + $0x8] sm:$0xff]   ;;  %v423_v25 = vld [vmem:[%s609_s1 + $0x30] sm:$0xff]  }
   0x5   :  { %v389_v9 = vunpack.c.l.bf16 %v388_v6  ;;  %v390_v10 = vunpack.c.h.bf16 %v388_v6  ;;  %v424_v15 = vld [vmem:[%s609_s1 + $0x40] sm:$0xff]   ;;  %v393_v26 = vunpack.c.l.bf16 %v419_v22  ;;  %v394_v27 = vunpack.c.h.bf16 %v419_v22  ;;  %v425_v30 = vld [vmem:[%s609_s1 + $0x48] sm:$0xff]  }
   0x6   :  { %439 = vmatpush3.bf16.msra.mxu0 %v475_v3  ;;  %v413_v18 = vunpack.c.l.bf16 %v424_v15  ;;  %v421_v24 = vld [vmem:[%s609_s1 + $0x20] sm:$0xff]   ;;  %v409_v29 = vunpack.c.l.bf16 %v423_v25  ;;  %v410_v33 = vunpack.c.h.bf16 %v423_v25 }
   0x7   :  { %455 = vmatpush3.bf16.msra.mxu1 %v476_v4  ;;  %v40_v19 = vadd.f32 %v389_v9, %v35_v12  ;;  %v41_v20 = vadd.f32 %v397_v11, %v390_v10  ;;  %v401_v28 = vunpack.c.l.bf16 %v421_v24 }
   0x9   :  { %441 = vmatmul.mubr.msk.bf16.vlgmr.msra.gmra.mxu0 %vm111_vm1, %v477_v5  ;;  %v56_v31 = vadd.f32 %v405_v16, %v40_v19  ;;  %v57_v32 = vadd.f32 %v406_v17, %v41_v20 }
   0xa   :  { %444 = vmatprep.mubr.msk.bf16.mxu0 %vm503_vm0, %v502_v1 }
   0xb   :  { %9 = vsyncpa [#allocation3], 0  ;;  %v42_v34 = vadd.f32 %v398_v23, %v393_v26  ;;  %v43_v35 = vadd.f32 %v401_v28, %v394_v27  ;;  %v414_v36 = vunpack.c.h.bf16 %v424_v15  ;;  %v417_v37 = vunpack.c.l.bf16 %v425_v30  ;;  %v478_v42 = vld [vmem:[%s608_s0 + $0x8] sm:$0xff]   ;;  %v479_v53 = vld [vmem:[%s608_s0 + $0x10] ss:$0 sps:$4 sm:$0xff]   ;;  %s504_s0 = smov [#allocation2]  }
   0xc   :  { %v72_v38 = vadd.f32 %v67_v21, %v56_v31  ;;  %v73_v39 = vadd.f32 %v413_v18, %v57_v32  ;;  %v28_v40 = vunpack.c.l.bf16 %v339_v7  ;;  %v402_v41 = vunpack.c.h.bf16 %v421_v24  ;;  %s328_s20 = sshll.u32 %s504_s0, 4  ;;  %s329_s20 = int_to_ptr.vmem [resolvable:$true] %s328_s20 }
   0xd   :  { %v58_v43 = vadd.f32 %v409_v29, %v42_v34  ;;  %v59_v44 = vadd.f32 %v410_v33, %v43_v35  ;;  %v55_v49 = vunpack.c.l.bf16 %v349_v14  ;;  %v418_v52 = vunpack.c.h.bf16 %v425_v30  ;;  %s480_s21 = scalar_lea.vmem %s329_s20, 640  ;;  %p485_p1 = scmp.lt.s32.totalorder %s329_s20, %s329_s20 }
   0xe   :  { %v177_v45 = vpack.c.bf16 %v73_v39, %v72_v38  ;;  %v44_v48 = vadd.f32 %v402_v41, %v28_v40  ;;  %p481_p0 = scmp.ne.s32.totalorder %s329_s20, %s480_s21  ;;  %p486_p2 = scmp.lt.s32.totalorder %s480_s21, %s480_s21 }
   0xf   :  { %v74_v46 = vadd.f32 %v414_v36, %v58_v43  ;;  %v75_v47 = vadd.f32 %v417_v37, %v59_v44 }
  0x10   :  { %457 = vmatmul.mubr.msk.bf16.vlgmr.msra.gmra.mxu1 %vm111_vm1, %v177_v45  ;;  %v60_v51 = vadd.f32 %v55_v49, %v44_v48  ;;  %p487_p3 = por %p486_p2, %p485_p1 }
  0x11   :  { %445 = vmatmul.mubr.msk.bf16.gmra.mxu0 %vm111_vm1, %v478_v42  ;;  %460 = vmatprep.mubr.msk.bf16.mxu1 %vm503_vm0, %v502_v1  ;;  %v178_v50 = vpack.c.bf16 %v75_v47, %v74_v46 }
  0x12   :  { %448 = vmatprep.mubr.msk.bf16.mxu0 %vm503_vm0, %v502_v1  ;;  %v76_v54 = vadd.f32 %v418_v52, %v60_v51  ;;  %p488_p4 = pnand %p487_p3, %p481_p0 }
  0x14   :  { %v179_v55 = vpack.c.bf16 %v76_v54, %v76_v54 }
  0x18   :  { %461 = vmatmul.mubr.msk.bf16.gmra.mxu1 %vm111_vm1, %v178_v50 }
  0x19   :  { %449 = vmatmul.mubr.msk.bf16.gmra.mxu0 %vm111_vm1, %v479_v53  ;;  %464 = vmatprep.mubr.msk.bf16.mxu1 %vm503_vm0, %v502_v1 }
  0x20   :  { %465 = vmatmul.mubr.msk.bf16.gmra.mxu1 %vm111_vm1, %v179_v55 }
  0xc9   :  { %v155_v56 = vpop.f32.mrf.mxu0 }
  0xca   :  { %v261_v57 = vmax.f32 %v155_v56, 0.0 }
  0xcb   :  { %v442_v58 = vpop.f32.mrf.mxu0 }
  0xcc   :  { %v377_v59 = vpack.c.bf16 %v261_v57, %v261_v57 }
  0xcd   :  { %v158_v60 = vpop.f32.mrf.mxu0 }
  0xce   :  { %292 = vst [vmem:[#allocation2] sm:$0xf] %v377_v59  ;;  %v262_v61 = vmax.f32 %v158_v60, 0.0 }
  0xcf   :  { %v443_v62 = vpop.f32.mrf.mxu0 }
  0xd0   :  { %v239_v63 = vpop.f32.mrf.mxu1  ;;  %v378_v0 = vpack.c.bf16 %v262_v61, %v262_v61 }
  0xd1   :  { %v266_v2 = vmax.f32 %v239_v63, 0.0  ;;  %v163_v3 = vpop.f32.mrf.mxu0 }
  0xd2   :  { %v458_v4 = vpop.f32.mrf.mxu1  ;;  %293 = vst [vmem:[#allocation2 + $0x8] sm:$0xf] %v378_v0  ;;  %v263_v5 = vmax.f32 %v163_v3, 0.0 }
  0xd3   :  { %v382_v6 = vpack.c.bf16 %v266_v2, %v266_v2  ;;  %v446_v1 = vpop.f32.mrf.mxu0 }
  0xd4   :  { %v242_v7 = vpop.f32.mrf.mxu1  ;;  %v379_v8 = vpack.c.bf16 %v263_v5, %v263_v5 }
  0xd5   :  { %318 = vst [vmem:[#allocation2 + $0x4] sm:$0xf] %v382_v6  ;;  %v267_v9 = vmax.f32 %v242_v7, 0.0  ;;  %v166_v10 = vpop.f32.mrf.mxu0 }
  0xd6   :  { %v459_v11 = vpop.f32.mrf.mxu1  ;;  %294 = vst [vmem:[#allocation2 + $0x10] sm:$0xf] %v379_v8  ;;  %v264_v12 = vmax.f32 %v166_v10, 0.0 }
  0xd7   :  { %v383_v13 = vpack.c.bf16 %v267_v9, %v267_v9  ;;  %v447_v14 = vpop.f32.mrf.mxu0 }
  0xd8   :  { %v247_v15 = vpop.f32.mrf.mxu1  ;;  %v380_v16 = vpack.c.bf16 %v264_v12, %v264_v12 }
  0xd9   :  { %319 = vst [vmem:[#allocation2 + $0xc] sm:$0xf] %v383_v13  ;;  %v268_v17 = vmax.f32 %v247_v15, 0.0  ;;  %v171_v18 = vpop.f32.mrf.mxu0 }
  0xda   :  { %v462_v19 = vpop.f32.mrf.mxu1  ;;  %295 = vst [vmem:[#allocation2 + $0x18] sm:$0xf] %v380_v16  ;;  %v265_v20 = vmax.f32 %v171_v18, 0.0 }
  0xdb   :  { %v384_v21 = vpack.c.bf16 %v268_v17, %v268_v17  ;;  %v450_v22 = vpop.f32.mrf.mxu0 }
  0xdc   :  { %v250_v23 = vpop.f32.mrf.mxu1  ;;  %v381_v24 = vpack.c.bf16 %v265_v20, %v265_v20 }
  0xdd   :  { %320 = vst [vmem:[#allocation2 + $0x14] sm:$0xf] %v384_v21  ;;  %v269_v25 = vmax.f32 %v250_v23, 0.0  ;;  %v174_v26 = vpop.f32.mrf.mxu0 }
  0xde   :  { %v463_v27 = vpop.f32.mrf.mxu1  ;;  %296 = vst [vmem:[#allocation2 + $0x20] sm:$0xf] %v381_v24 }
  0xdf   :  { %v385_v28 = vpack.c.bf16 %v269_v25, %v269_v25  ;;  %v451_v29 = vpop.f32.mrf.mxu0 }
  0xe0   :  { %v255_v30 = vpop.f32.mrf.mxu1 }
  0xe1   :  { %321 = vst [vmem:[#allocation2 + $0x1c] sm:$0xf] %v385_v28  ;;  %v270_v31 = vmax.f32 %v255_v30, 0.0 }
  0xe2   :  { %v466_v32 = vpop.f32.mrf.mxu1 }
  0xe3   :  { %v386_v33 = vpack.c.bf16 %v270_v31, %v270_v31 }
  0xe4   :  { %v258_v34 = vpop.f32.mrf.mxu1 }
  0xe5   :  { %322 = vst [vmem:[#allocation2 + $0x24] sm:$0xf] %v386_v33 }
  0xe6   :  { %v467_v35 = vpop.f32.mrf.mxu1 }
  0xe7   :  { %491 = shalt.err (!%p488_p4)
}
  0xe8   :  { %s505_s22 = smov 128   ;;  %s506_s23 = smov 8  }
  0xe9   :  { %334 = dma.vmem_to_hbm [thread:$0]  %s329_s20, 640, %s612_s4, [#allocation3], %s505_s22, %s505_s22, %s506_s23  }
  0xea   :  { %500 = dma.done.wait [#allocation3], 640  }
  0xeb   :  { %501 = vsyncadd [#allocation3], 4294966656 }
  0xec   :  { %338 = vsyncpa [#allocation3], 1 }

</bundles_post_ra>
